<compile_context>
chip_gen: v7x
topology: tpu7x:2x2x1
jax: 0.10.0
libtpu: 0.0.40
codegen_flags: <defaults>
</compile_context>

<pallas_src>
import jax
import jax.numpy as jnp
from jax.experimental import pallas as pl
from jax.experimental.pallas import tpu as pltpu

HIDDEN_SIZE = 16
NUM_NODES = 5
INPUT_SIZE = NUM_NODES
OUTPUT_SIZE = NUM_NODES

# Hidden dim padded to one full 128-lane vreg.  h never leaves VMEM, so this
# costs no HBM traffic; the padded hidden lanes are exactly zero (zero W1
# columns, zero bias, ReLU(0)=0, zero W2 rows) and contribute nothing.
HID_PAD = 128

MAX_BATCH_TILE = 4096   # (tb x 128-lane) f32 in + out blocks, double-buffered,
                        # stays ~8 MiB VMEM -> safe on v5e/v6e/v7x defaults.
TARGET_TILES = 8        # >= 8 grid steps when B allows: amortizes the
                        # ~0.35us/step overhead and feeds both v7x TensorCores.


def qnetwork_kernel(x_ref, w1_ref, b1_ref, w2_ref, b2_ref, o_ref):
    # All f32: HBM-bandwidth-bound kernel, so f32 MXU operands are free and the
    # result matches the f32 PyTorch module (modulo accumulation order).
    x = x_ref[...]                                                # (tb, 5)
    h = jnp.dot(x, w1_ref[...], preferred_element_type=jnp.float32)
    h = jnp.maximum(h + b1_ref[...], 0.0)                         # (tb, HID_PAD)
    out = jnp.dot(h, w2_ref[...], preferred_element_type=jnp.float32)
    o_ref[...] = (out + b2_ref[...]).astype(o_ref.dtype)          # (tb, 5)


def qnetwork_forward(x, w1p, b1p, w2p, b2p, *,
                     max_batch_tile=MAX_BATCH_TILE, target_tiles=TARGET_TILES):
    """x: (B, INPUT_SIZE) float32.  Returns (B, OUTPUT_SIZE) float32.

    Expects padded params from `pad_params`:
      w1p (INPUT_SIZE, HID_PAD) f32, b1p (1, HID_PAD) f32,
      w2p (HID_PAD, OUTPUT_SIZE) f32, b2p (1, OUTPUT_SIZE) f32.
    """
    B = x.shape[0]
    # Batch tile: aim for >= target_tiles grid steps, multiple of 8 sublanes,
    # capped so double-buffered VMEM stays small on every TPU generation.
    tb = ((pl.cdiv(B, target_tiles) + 7) // 8) * 8
    tb = min(tb, max_batch_tile)
    if tb >= B:
        tb = B  # single block == full array dims (exempt from the 8-row rule)
    n_tiles = pl.cdiv(B, tb)

    return pl.pallas_call(
        qnetwork_kernel,
        out_shape=jax.ShapeDtypeStruct((B, OUTPUT_SIZE), jnp.float32),
        grid_spec=pl.GridSpec(
            grid=(n_tiles,),
            in_specs=[
                pl.BlockSpec((tb, INPUT_SIZE), lambda i: (i, 0)),      # x tile
                pl.BlockSpec((INPUT_SIZE, HID_PAD), lambda i: (0, 0)),  # W1
                pl.BlockSpec((1, HID_PAD), lambda i: (0, 0)),           # b1
                pl.BlockSpec((HID_PAD, OUTPUT_SIZE), lambda i: (0, 0)), # W2
                pl.BlockSpec((1, OUTPUT_SIZE), lambda i: (0, 0)),       # b2
            ],
            out_specs=pl.BlockSpec((tb, OUTPUT_SIZE), lambda i: (i, 0)),
        ),
        compiler_params=pltpu.CompilerParams(
            # Batch tiles are independent: shard across TensorCores on v7x.
            dimension_semantics=("parallel",),
        ),
    )(x, w1p, b1p, w2p, b2p)


def init_params(key):
    """Deterministic init matching nn.Linear's U(-1/sqrt(fan_in), 1/sqrt(fan_in)).
    Weights are stored (in, out), i.e. transposed vs. PyTorch nn.Linear."""
    k1, k2, k3, k4 = jax.random.split(key, 4)
    bound1 = 1.0 / jnp.sqrt(jnp.float32(INPUT_SIZE))
    bound2 = 1.0 / jnp.sqrt(jnp.float32(HIDDEN_SIZE))
    w1 = jax.random.uniform(k1, (INPUT_SIZE, HIDDEN_SIZE), jnp.float32,
                            -bound1, bound1)
    b1 = jax.random.uniform(k2, (HIDDEN_SIZE,), jnp.float32, -bound1, bound1)
    w2 = jax.random.uniform(k3, (HIDDEN_SIZE, OUTPUT_SIZE), jnp.float32,
                            -bound2, bound2)
    b2 = jax.random.uniform(k4, (OUTPUT_SIZE,), jnp.float32, -bound2, bound2)
    return w1, b1, w2, b2


def pad_params(w1, b1, w2, b2):
    """One-time layout plumbing: zero-pad only the hidden dim to 128 lanes."""
    w1p = jnp.zeros((INPUT_SIZE, HID_PAD), jnp.float32)
    w1p = w1p.at[:, :HIDDEN_SIZE].set(w1.astype(jnp.float32))
    b1p = jnp.zeros((1, HID_PAD), jnp.float32).at[0, :HIDDEN_SIZE].set(b1)
    w2p = jnp.zeros((HID_PAD, OUTPUT_SIZE), jnp.float32)
    w2p = w2p.at[:HIDDEN_SIZE, :].set(w2.astype(jnp.float32))
    b2p = b2.reshape(1, OUTPUT_SIZE).astype(jnp.float32)
    return w1p, b1p, w2p, b2p


def reference_forward(x, w1, b1, w2, b2):
    h = jnp.maximum(x @ w1 + b1, 0.0)
    return h @ w2 + b2


if __name__ == "__main__":
    key = jax.random.PRNGKey(0)
    kx, kp = jax.random.split(key)
    w1, b1, w2, b2 = init_params(kp)
    w1p, b1p, w2p, b2p = pad_params(w1, b1, w2, b2)

    # Small shapes consistent with the module (num_nodes=5 features).
    batch = 8
    x = jax.random.normal(kx, (batch, INPUT_SIZE), jnp.float32)
    out = jax.block_until_ready(qnetwork_forward(x, w1p, b1p, w2p, b2p))
    assert out.shape == (batch, OUTPUT_SIZE)
    assert jnp.allclose(out, reference_forward(x, w1, b1, w2, b2),
                        atol=1e-5, rtol=1e-5)

    # Multi-tile + ragged-last-tile path (exercises the pipelined grid).
    batch2 = 1000
    x2 = jax.random.normal(jax.random.PRNGKey(1), (batch2, INPUT_SIZE),
                           jnp.float32)
    out2 = jax.block_until_ready(qnetwork_forward(x2, w1p, b1p, w2p, b2p))
    assert out2.shape == (batch2, OUTPUT_SIZE)
    assert jnp.allclose(out2, reference_forward(x2, w1, b1, w2, b2),
                        atol=1e-5, rtol=1e-5)

    print("KERNEL_OK")
</pallas_src>

<mosaic_0001>
module attributes {stable_mosaic.version = 11 : i64} {
  func.func @qnetwork_kernel(%arg0: i32, %arg1: memref<8x5xf32, #tpu.memory_space<vmem>>, %arg2: memref<5x128xf32, #tpu.memory_space<vmem>>, %arg3: memref<1x128xf32, #tpu.memory_space<vmem>>, %arg4: memref<128x5xf32, #tpu.memory_space<vmem>>, %arg5: memref<1x5xf32, #tpu.memory_space<vmem>>, %arg6: memref<8x5xf32, #tpu.memory_space<vmem>>) attributes {dimension_semantics = [#tpu.dimension_semantics<parallel>], iteration_bounds = array<i64: 1>, scalar_prefetch = 0 : i64, scratch_operands = 0 : i64, tpu.core_type = #tpu.core_type<tc>, window_params = [{transform_indices = @transform_0, window_bounds = array<i64: 8, 5>}, {pipeline_mode = #tpu.pipeline_mode<synchronous>, transform_indices = @transform_1, window_bounds = array<i64: 5, 128>}, {pipeline_mode = #tpu.pipeline_mode<synchronous>, transform_indices = @transform_2, window_bounds = array<i64: 1, 128>}, {pipeline_mode = #tpu.pipeline_mode<synchronous>, transform_indices = @transform_3, window_bounds = array<i64: 128, 5>}, {pipeline_mode = #tpu.pipeline_mode<synchronous>, transform_indices = @transform_4, window_bounds = array<i64: 1, 5>}, {transform_indices = @transform_5, window_bounds = array<i64: 8, 5>}]} {
    %c0 = arith.constant 0 : index
    %c0_0 = arith.constant 0 : index
    %0 = vector.load %arg1[%c0, %c0_0] : memref<8x5xf32, #tpu.memory_space<vmem>>, vector<8x5xf32>
    %c0_1 = arith.constant 0 : index
    %c0_2 = arith.constant 0 : index
    %1 = vector.load %arg2[%c0_1, %c0_2] : memref<5x128xf32, #tpu.memory_space<vmem>>, vector<5x128xf32>
    %cst = arith.constant dense<0.000000e+00> : vector<8x128xf32>
    %2 = tpu.matmul %0, %1, %cst {dimension_numbers = #tpu.dot_dimension_numbers<[1], [0], [0], [1], [0, 0, 1, 1], [], []>} : vector<8x5xf32>, vector<5x128xf32>, vector<8x128xf32> -> vector<8x128xf32>
    %c0_3 = arith.constant 0 : index
    %c0_4 = arith.constant 0 : index
    %3 = vector.load %arg3[%c0_3, %c0_4] : memref<1x128xf32, #tpu.memory_space<vmem>>, vector<1x128xf32>
    %4 = vector.broadcast %3 : vector<1x128xf32> to vector<8x128xf32>
    %5 = arith.addf %2, %4 : vector<8x128xf32>
    %cst_5 = arith.constant 0.000000e+00 : f32
    %6 = vector.broadcast %cst_5 : f32 to vector<8x128xf32>
    %7 = arith.maximumf %5, %6 : vector<8x128xf32>
    %c0_6 = arith.constant 0 : index
    %c0_7 = arith.constant 0 : index
    %8 = vector.load %arg4[%c0_6, %c0_7] : memref<128x5xf32, #tpu.memory_space<vmem>>, vector<128x5xf32>
    %cst_8 = arith.constant dense<0.000000e+00> : vector<8x5xf32>
    %9 = tpu.matmul %7, %8, %cst_8 {dimension_numbers = #tpu.dot_dimension_numbers<[1], [0], [0], [1], [0, 0, 1, 1], [], []>} : vector<8x128xf32>, vector<128x5xf32>, vector<8x5xf32> -> vector<8x5xf32>
    %c0_9 = arith.constant 0 : index
    %c0_10 = arith.constant 0 : index
    %10 = vector.load %arg5[%c0_9, %c0_10] : memref<1x5xf32, #tpu.memory_space<vmem>>, vector<1x5xf32>
    %11 = vector.broadcast %10 : vector<1x5xf32> to vector<8x5xf32>
    %12 = arith.addf %9, %11 : vector<8x5xf32>
    %c0_11 = arith.constant 0 : index
    %c0_12 = arith.constant 0 : index
    %13 = vector.load %arg6[%c0_11, %c0_12] : memref<8x5xf32, #tpu.memory_space<vmem>>, vector<8x5xf32>
    tpu.vector_store %arg6[%c0_11, %c0_12], %12 {strides = array<i32>} : memref<8x5xf32, #tpu.memory_space<vmem>>, vector<8x5xf32>,
    return
  }
  func.func @transform_0(%arg0: i32) -> (i32, i32) {
    %c0_i32 = arith.constant 0 : i32
    %c0_i32_0 = arith.constant 0 : i32
    return %arg0, %c0_i32 : i32, i32
  }
  func.func @transform_1(%arg0: i32) -> (i32, i32) {
    %c0_i32 = arith.constant 0 : i32
    %c0_i32_0 = arith.constant 0 : i32
    %c0_i32_1 = arith.constant 0 : i32
    return %c0_i32, %c0_i32_0 : i32, i32
  }
  func.func @transform_2(%arg0: i32) -> (i32, i32) {
    %c0_i32 = arith.constant 0 : i32
    %c0_i32_0 = arith.constant 0 : i32
    %c0_i32_1 = arith.constant 0 : i32
    return %c0_i32, %c0_i32_0 : i32, i32
  }
  func.func @transform_3(%arg0: i32) -> (i32, i32) {
    %c0_i32 = arith.constant 0 : i32
    %c0_i32_0 = arith.constant 0 : i32
    %c0_i32_1 = arith.constant 0 : i32
    return %c0_i32, %c0_i32_0 : i32, i32
  }
  func.func @transform_4(%arg0: i32) -> (i32, i32) {
    %c0_i32 = arith.constant 0 : i32
    %c0_i32_0 = arith.constant 0 : i32
    %c0_i32_1 = arith.constant 0 : i32
    return %c0_i32, %c0_i32_0 : i32, i32
  }
  func.func @transform_5(%arg0: i32) -> (i32, i32) {
    %c0_i32 = arith.constant 0 : i32
    %c0_i32_0 = arith.constant 0 : i32
    return %arg0, %c0_i32 : i32, i32
  }
}

</mosaic_0001>

<bundles_post_ra>
// kernel: tpu_custom_call.1
= control target key start
LH: loop header
LB: loop body
LE: loop exit
PB: predicated region body
PF: predicated region fallthrough
CT: control target
= control target key end

     0   :  { %vm34_vm0 = vcmask 1044480   ;;  %v332_v2 = vmov 0.0   ;;  %vm333_vm1 = vmmov 0   ;;  %vm30_vm2 = vcmask 39936   ;;  %s440_s0 = inlined_call_operand.vmem [shape: f32[8,5], index: 0, kind: input, shape index: {}]   ;;  %s441_s1 = inlined_call_operand.vmem [shape: f32[5,128], index: 1, kind: input, shape index: {}]   ;;  %s442_s2 = inlined_call_operand.vmem [shape: f32[1,128], index: 2, kind: input, shape index: {}]   ;;  %s443_s3 = inlined_call_operand.vmem [shape: f32[128,5], index: 3, kind: input, shape index: {}]   ;;  %s444_s4 = inlined_call_operand.vmem [shape: f32[1,5], index: 4, kind: input, shape index: {}]   ;;  %s445_s5 = inlined_call_operand.hbm [shape: f32[8,5], index: 5, kind: output, shape index: {}]  }
   0x1   :  { %v22_v0 = vld [vmem:[%s441_s1] sm:$0x1f]  ;;  %240 = vmatprep.subr.mxu0 %v332_v2  ;;  %242 = vmatprep.mubr.msk.f32.mxu0 %vm333_vm1, %v332_v2  ;;  %v110_v4 = vld [vmem:[%s443_s3 + $0x8] sm:$0xff]  ;;  %v111_v5 = vld [vmem:[%s443_s3 + $0x10] sm:$0xff]  ;;  %v334_v6 = vmov 0.0|0.0  }
   0x2   :  { %v21_v1 = vld [vmem:[%s440_s0] sm:$0xff]  ;;  %241 = vmatpush3.msk.msra.mxu0 %vm34_vm0, %v22_v0  ;;  %280 = vmatprep.subr.bf16.mxu1 %v334_v6  ;;  %v112_v8 = vld [vmem:[%s443_s3 + $0x18] sm:$0xff]  ;;  %v114_v11 = vld [vmem:[%s443_s3 + $0x28] sm:$0xff] }
   0x3   :  { %v109_v3 = vld [vmem:[%s443_s3] sm:$0xff]  ;;  %243 = vmatmul.mubr.msk.f32.vlgmr.msra.gmra.mrb[0].mxu0 %vm30_vm2, %v21_v1  ;;  %277 = vmatprep.mubr.msk.f32.mxu1 %vm333_vm1, %v332_v2  ;;  %v284_v9 = vpack.c.bf16 %v112_v8, %v111_v5 }
   0x4   :  { %v281_v7 = vpack.c.bf16 %v110_v4, %v109_v3  ;;  %v113_v10 = vld [vmem:[%s443_s3 + $0x20] sm:$0xff] }
   0x6   :  { %282 = vmatpush3.bf16.msra.mxu1 %v281_v7 }
   0x7   :  { %283 = vmatprep.subr.bf16.mxu1 %v334_v6 }
   0x8   :  { %10 = vsyncpa [#allocation3], 0  ;;  %v287_v12 = vpack.c.bf16 %v114_v11, %v113_v10  ;;  %v115_v13 = vld [vmem:[%s443_s3 + $0x30] sm:$0xff]  ;;  %v116_v14 = vld [vmem:[%s443_s3 + $0x38] sm:$0xff]  ;;  %s335_s29 = smov [#allocation2]  }
   0x9   :  { %v290_v15 = vpack.c.bf16 %v116_v14, %v115_v13  ;;  %v117_v16 = vld [vmem:[%s443_s3 + $0x40] sm:$0xff]  ;;  %v118_v17 = vld [vmem:[%s443_s3 + $0x48] sm:$0xff]  ;;  %v119_v19 = vld [vmem:[%s443_s3 + $0x50] sm:$0xff]  ;;  %s209_s30 = sshll.u32 %s335_s29, 4  ;;  %s210_s30 = int_to_ptr.vmem [resolvable:$true] %s209_s30 }
   0xa   :  { %285 = vmatpush3.bf16.msra.mxu1 %v284_v9  ;;  %v293_v18 = vpack.c.bf16 %v118_v17, %v117_v16  ;;  %v120_v20 = vld [vmem:[%s443_s3 + $0x58] sm:$0xff]  ;;  %v121_v22 = vld [vmem:[%s443_s3 + $0x60] sm:$0xff]  ;;  %v122_v23 = vld [vmem:[%s443_s3 + $0x68] sm:$0xff]  ;;  %p313_p1 = scmp.lt.s32.totalorder %s210_s30, %s210_s30 }
   0xb   :  { %286 = vmatprep.subr.bf16.mxu1 %v334_v6  ;;  %v296_v21 = vpack.c.bf16 %v120_v20, %v119_v19  ;;  %v299_v24 = vpack.c.bf16 %v122_v23, %v121_v22  ;;  %v123_v25 = vld [vmem:[%s443_s3 + $0x70] sm:$0xff]  ;;  %v124_v26 = vld [vmem:[%s443_s3 + $0x78] sm:$0xff]  ;;  %v217_v28 = vld [vmem:[%s442_s2] ss:$0 sm:$0xff]  ;;  %s308_s3 = scalar_lea.vmem %s210_s30, 128 }
   0xc   :  { %v302_v27 = vpack.c.bf16 %v124_v26, %v123_v25  ;;  %v220_v33 = vld [vmem:[%s444_s4] ss:$0 sm:$0xff]  ;;  %p309_p0 = scmp.ne.s32.totalorder %s210_s30, %s308_s3  ;;  %p314_p2 = scmp.lt.s32.totalorder %s308_s3, %s308_s3 }
   0xe   :  { %288 = vmatpush3.bf16.msra.mxu1 %v287_v12  ;;  %p315_p3 = por %p314_p2, %p313_p1 }
   0xf   :  { %289 = vmatprep.subr.bf16.mxu1 %v334_v6 }
  0x10   :  { %p316_p4 = pnand %p315_p3, %p309_p0 }
  0x12   :  { %291 = vmatpush3.bf16.msra.mxu1 %v290_v15 }
  0x13   :  { %292 = vmatprep.subr.bf16.mxu1 %v334_v6 }
  0x16   :  { %294 = vmatpush3.bf16.msra.mxu1 %v293_v18 }
  0x17   :  { %295 = vmatprep.subr.bf16.mxu1 %v334_v6 }
  0x1a   :  { %297 = vmatpush3.bf16.msra.mxu1 %v296_v21 }
  0x1b   :  { %298 = vmatprep.subr.bf16.mxu1 %v334_v6 }
  0x1e   :  { %300 = vmatpush3.bf16.msra.mxu1 %v299_v24 }
  0x1f   :  { %301 = vmatprep.subr.bf16.mxu1 %v334_v6 }
  0x22   :  { %303 = vmatpush3.bf16.msra.mxu1 %v302_v27 }
  0xd6   :  { %v104_v29 = vpop.f32.mrb[0].mxu0 }
  0xd7   :  { %v105_v30 = vadd.f32 %v217_v28, %v104_v29  ;;  %v244_v31 = vpop.f32.mrb[1].mxu0 }
  0xd9   :  { %v108_v32 = vmax.f32 %v105_v30, 0.0 }
  0xdb   :  { %278 = vmatmul.mubr.f32.vlgmr.msra.gmra.mrb[0].mxu1 %v108_v32 }
 0x1ae   :  { %v198_v34 = vpop.f32.mrb[0].mxu1 }
 0x1af   :  { %v199_v35 = vadd.f32 %v220_v33, %v198_v34  ;;  %v279_v36 = vpop.f32.mrb[1].mxu1 }
 0x1b1   :  { %202 = vst.msk [vmem:[#allocation2] sm:$0xff] %vm30_vm2, %v199_v35 }
 0x1b2   :  { %319 = shalt.err (!%p316_p4)
}
 0x1b3   :  { %s320_s7 = scalar_lea.hbm %s445_s5, 128 }
 0x1b4   :  { %p321_p5 = scmp.ne.s32.totalorder %s445_s5, %s320_s7  ;;  %p324_p6 = scmp.lt.u32.totalorder %s320_s7, %s445_s5 }
 0x1b6   :  { %p326_p7 = pnand %p324_p6, %p321_p5 }
 0x1b8   :  { %329 = shalt.err (!%p326_p7)
}
 0x1b9   :  { %212 = dma.vmem_to_hbm [thread:$0]  %s210_s30, 128, %s445_s5, [#allocation3]  }
 0x1ba   :  { %330 = dma.done.wait [#allocation3], 128  }
 0x1bb   :  { %331 = vsyncadd [#allocation3], 4294967168 }
 0x1bc   :  { %216 = vsyncpa [#allocation3], 1 }

</bundles_post_ra>
